<compile_context>
chip_gen: v6e
topology: v6e:2x2x1
jax: 0.10.0
libtpu: 0.0.40
codegen_flags: <defaults>
</compile_context>

<pallas_src>
import functools

import jax
import jax.numpy as jnp
from jax.experimental import pallas as pl
from jax.experimental.pallas import tpu as pltpu


def _round_up(n, m):
    return ((n + m - 1) // m) * m


def atr_kernel(seqlen_ref, p_ref, wh_ref, bh_ref,
               out_ref, hfinal_ref, h_scratch, *, block_t):
    """One grid step = one (batch_block, time_chunk); recurrence carried in h_scratch.

    NOTE: correctness relies on the time axis being the LAST ("arbitrary") grid
    dimension so all chunks of a batch block run back-to-back on one core.
    """
    tc = pl.program_id(1)

    @pl.when(tc == 0)
    def _():
        h_scratch[...] = jnp.zeros_like(h_scratch)

    wh = wh_ref[...]                      # (Hp, Hp) bf16 Wh^T, resident (constant index_map)
    bh = bh_ref[...]                      # (1, Hp)  f32
    seqlen = seqlen_ref[...]              # (Bb, 1)  int32
    h = h_scratch[...]                    # (Bb, Hp) f32 carried hidden state
    bb = h.shape[0]

    # Hoisted validity mask for the whole chunk: a single (Bb, block_t) vreg.
    t_base = tc * block_t
    step_iota = jax.lax.broadcasted_iota(jnp.int32, (bb, block_t), 1)
    mask = ((t_base + step_iota) < seqlen).astype(jnp.float32)     # (Bb, block_t)

    # Statically unrolled inner time loop: h stays in vregs, full scheduler visibility.
    # TODO(synk): weight-stationary MXU driving (pltpu.matmul_push_rhs once per chunk,
    # matmul_acc_lhs/matmul_pop per step) would cut per-step MXU weight pushes further.
    for s in range(block_t):
        p = p_ref[s]                      # (Bb, Hp) f32 — time-major => dense (8,128) vld
        # bf16 MXU operands, f32 accumulate; gates/state stay f32.
        q = jnp.dot(h.astype(jnp.bfloat16), wh,
                    preferred_element_type=jnp.float32) + bh
        i_gate = jax.nn.sigmoid(p + q)    # EUP sigmoid, f32
        f_gate = jax.nn.sigmoid(p - q)
        h_new = i_gate * p + f_gate * h
        m = mask[:, s:s + 1]              # (Bb, 1) — arithmetic masking, no jnp.where
        h = h + m * (h_new - h)           # padded rows / padded steps keep previous state
        out_ref[s] = m * h_new            # dense (8,128) vst (lane-dense output)

    h_scratch[...] = h

    @pl.when(tc == pl.num_programs(1) - 1)
    def _():
        hfinal_ref[...] = h               # write the resident final-state block once


def atr_forward(x, seq_lengths, wi, bi, wh, bh, *, block_t=64, block_b=None):
    """ATR forward pass.

    x:           (B, T, I) batch-first padded inputs (padding assumed zero, as produced
                 by pad_packed_sequence).
    seq_lengths: (B,) int valid lengths.
    wi, bi:      i2h.weight (H, I), i2h.bias (H,).
    wh, bh:      h2h.weight (H, H), h2h.bias (H,).
    Returns (outputs (B, T, H), final_h (B, H)).  Dropout = 0.0 / eval mode.

    block_b (v7x only): pass padded_batch // 2 (a multiple of 8) to shard batch blocks
    across both TensorCores — only worthwhile when padded batch >= 16; on v5e/v6e
    (single TC) leave it as None.
    """
    B, T, I = x.shape
    H = wh.shape[0]

    Hp = _round_up(H, 128)
    Bp = _round_up(B, 8)
    Tc = max(8, min(block_t, _round_up(T, 8)))
    Tp = _round_up(T, Tc)
    Bb = Bp if block_b is None else block_b
    assert Bb % 8 == 0 and Bp % Bb == 0, "block_b must be a multiple of 8 dividing padded batch"

    # ---- Hoisted, padded, TIME-MAJOR input projection ---------------------------------
    # Pad x / Wi / bi first, then one big bf16 matmul with f32 accumulation writes the
    # padded time-major (Tp, Bp, Hp) array directly (no second padding pass over the
    # largest tensor).  Padded time/batch positions get p = bi, but they are masked in
    # the kernel, so this is harmless.
    x_pad = jnp.zeros((Bp, Tp, I), jnp.bfloat16).at[:B, :T, :].set(
        jnp.asarray(x, jnp.bfloat16))
    wi_b = jnp.zeros((Hp, I), jnp.bfloat16).at[:H, :].set(jnp.asarray(wi, jnp.bfloat16))
    bi_p = jnp.zeros((Hp,), jnp.float32).at[:H].set(jnp.asarray(bi, jnp.float32))
    p_pad = jnp.einsum('bti,hi->tbh', x_pad, wi_b,
                       preferred_element_type=jnp.float32) + bi_p      # (Tp, Bp, Hp) f32

    # Recurrent weight as bf16 Wh^T (MXU is bf16-native on v5e/v6e/v7x; halves VMEM).
    wh_b = jnp.zeros((Hp, Hp), jnp.bfloat16).at[:H, :H].set(
        jnp.asarray(wh, jnp.bfloat16).T)
    bh_r = jnp.zeros((1, Hp), jnp.float32).at[:, :H].set(
        jnp.asarray(bh, jnp.float32).reshape(1, H))
    seqlen_pad = jnp.zeros((Bp, 1), jnp.int32).at[:B, 0].set(
        jnp.asarray(seq_lengths, jnp.int32))

    grid = (Bp // Bb, Tp // Tc)

    out_pad, hfinal_pad = pl.pallas_call(
        functools.partial(atr_kernel, block_t=Tc),
        out_shape=(jax.ShapeDtypeStruct((Tp, Bp, Hp), jnp.float32),
                   jax.ShapeDtypeStruct((Bp, Hp), jnp.float32)),
        grid_spec=pltpu.PrefetchScalarGridSpec(
            num_scalar_prefetch=0,
            grid=grid,
            in_specs=[
                pl.BlockSpec((Bb, 1), lambda b, t: (b, 0)),           # seq lengths (tiny)
                pl.BlockSpec((Tc, Bb, Hp), lambda b, t: (t, b, 0)),   # i2h projection, time-major
                pl.BlockSpec((Hp, Hp), lambda b, t: (0, 0)),          # Wh^T bf16 (constant)
                pl.BlockSpec((1, Hp), lambda b, t: (0, 0)),           # bh (constant)
            ],
            out_specs=[
                pl.BlockSpec((Tc, Bb, Hp), lambda b, t: (t, b, 0)),   # outputs, time-major
                pl.BlockSpec((Bb, Hp), lambda b, t: (b, 0)),          # final hidden (resident)
            ],
            scratch_shapes=[pltpu.VMEM((Bb, Hp), jnp.float32)],
        ),
        compiler_params=pltpu.CompilerParams(
            # Batch blocks are independent (megacore-parallel on v7x); time is the
            # recurrence and must run sequentially ("arbitrary", innermost).
            dimension_semantics=("parallel", "arbitrary"),
            # NOTE(v7x, large H): a resident bf16 Wh plus double-buffered p/out blocks
            # can exceed the 32 MiB scoped default — raise vmem_limit_bytes with
            # headroom and/or single-buffer the Wh block via pipeline_mode.
        ),
    )(seqlen_pad, p_pad, wh_b, bh_r)

    outputs = jnp.transpose(out_pad[:T, :B, :H], (1, 0, 2))   # back to batch-first (B, T, H)
    final_h = hfinal_pad[:B, :H]
    # TODO(synk): dropout (training mode) and optional init_state not implemented;
    # module defaults are dropout=0.0 and init_state=None (zeros).
    return outputs, final_h


def atr_reference(x, seq_lengths, wi, bi, wh, bh):
    """Pure-JAX f32 reference mirroring the PyTorch per-step loop."""
    B, T, I = x.shape
    H = wh.shape[0]
    h = jnp.zeros((B, H), jnp.float32)
    outs = jnp.zeros((B, T, H), jnp.float32)
    for step in range(T):
        xt = x[:, step, :].astype(jnp.float32)
        p = xt @ wi.T + bi
        q = h @ wh.T + bh
        i_g = jax.nn.sigmoid(p + q)
        f_g = jax.nn.sigmoid(p - q)
        h_new = i_g * p + f_g * h
        m = (step < seq_lengths).astype(jnp.float32)[:, None]
        h = m * h_new + (1.0 - m) * h
        outs = outs.at[:, step, :].set(m * h_new)
    return outs, h


if __name__ == "__main__":
    B, T, I, H = 4, 6, 32, 32

    key = jax.random.PRNGKey(0)
    k_x, k_wi, k_bi, k_wh, k_bh = jax.random.split(key, 5)

    # Deterministic parameter init matching reset_parameters(): uniform(-0.08, 0.08)
    wi = jax.random.uniform(k_wi, (H, I), jnp.float32, -0.08, 0.08)   # i2h.weight
    bi = jax.random.uniform(k_bi, (H,), jnp.float32, -0.08, 0.08)     # i2h.bias
    wh = jax.random.uniform(k_wh, (H, H), jnp.float32, -0.08, 0.08)   # h2h.weight
    bh = jax.random.uniform(k_bh, (H,), jnp.float32, -0.08, 0.08)     # h2h.bias

    x = jax.random.normal(k_x, (B, T, I), jnp.float32)
    seq_lengths = jnp.array([6, 5, 3, 2], dtype=jnp.int32)            # sorted descending

    # pad_packed_sequence yields zero padding.
    pad_mask = (jnp.arange(T)[None, :] < seq_lengths[:, None]).astype(jnp.float32)[..., None]
    x = x * pad_mask

    outputs, final_h = atr_forward(x, seq_lengths, wi, bi, wh, bh)
    outputs = jax.block_until_ready(outputs)
    final_h = jax.block_until_ready(final_h)

    ref_out, ref_h = atr_reference(x, seq_lengths, wi, bi, wh, bh)

    # Loosened tolerance vs. the f32 reference: the MXU operands (x, Wi, h, Wh) are bf16
    # with f32 accumulation, and rounding compounds over the T-step recurrence.
    assert jnp.allclose(outputs, ref_out, atol=2e-2, rtol=2e-2), "outputs mismatch"
    assert jnp.allclose(final_h, ref_h, atol=2e-2, rtol=2e-2), "final state mismatch"

    print("KERNEL_OK")
</pallas_src>

<mosaic_0001>
module attributes {stable_mosaic.version = 11 : i64} {
  func.func @atr_kernel(%arg0: i32, %arg1: i32, %arg2: memref<8x1xi32, #tpu.memory_space<vmem>>, %arg3: memref<8x8x128xf32, #tpu.memory_space<vmem>>, %arg4: memref<128x128xbf16, #tpu.memory_space<vmem>>, %arg5: memref<1x128xf32, #tpu.memory_space<vmem>>, %arg6: memref<8x8x128xf32, #tpu.memory_space<vmem>>, %arg7: memref<8x128xf32, #tpu.memory_space<vmem>>, %arg8: memref<8x128xf32, #tpu.memory_space<vmem>>) attributes {dimension_semantics = [#tpu.dimension_semantics<parallel>, #tpu.dimension_semantics<arbitrary>], iteration_bounds = array<i64: 1, 1>, scalar_prefetch = 0 : i64, scratch_operands = 1 : i64, tpu.core_type = #tpu.core_type<tc>, window_params = [{transform_indices = @transform_0, window_bounds = array<i64: 8, 1>}, {transform_indices = @transform_1, window_bounds = array<i64: 8, 8, 128>}, {pipeline_mode = #tpu.pipeline_mode<synchronous>, transform_indices = @transform_2, window_bounds = array<i64: 128, 128>}, {pipeline_mode = #tpu.pipeline_mode<synchronous>, transform_indices = @transform_3, window_bounds = array<i64: 1, 128>}, {transform_indices = @transform_4, window_bounds = array<i64: 8, 8, 128>}, {transform_indices = @transform_5, window_bounds = array<i64: 8, 128>}]} {
    %c0_i32 = arith.constant 0 : i32
    %0 = arith.cmpi eq, %arg1, %c0_i32 : i32
    %1 = arith.extui %0 : i1 to i32
    %c0_i32_0 = arith.constant 0 : i32
    %2 = arith.cmpi ne, %1, %c0_i32_0 : i32
    scf.if %2 {
      %cst_76 = arith.constant 0.000000e+00 : f32
      %267 = vector.broadcast %cst_76 : f32 to vector<8x128xf32>
      %c0_77 = arith.constant 0 : index
      %c0_78 = arith.constant 0 : index
      %268 = vector.load %arg8[%c0_77, %c0_78] : memref<8x128xf32, #tpu.memory_space<vmem>>, vector<8x128xf32>
      tpu.vector_store %arg8[%c0_77, %c0_78], %267 {strides = array<i32>} : memref<8x128xf32, #tpu.memory_space<vmem>>, vector<8x128xf32>,
    } else {
    }
    %c0 = arith.constant 0 : index
    %c0_1 = arith.constant 0 : index
    %3 = vector.load %arg4[%c0, %c0_1] : memref<128x128xbf16, #tpu.memory_space<vmem>>, vector<128x128xbf16>
    %c0_2 = arith.constant 0 : index
    %c0_3 = arith.constant 0 : index
    %4 = vector.load %arg5[%c0_2, %c0_3] : memref<1x128xf32, #tpu.memory_space<vmem>>, vector<1x128xf32>
    %c0_4 = arith.constant 0 : index
    %c0_5 = arith.constant 0 : index
    %5 = vector.load %arg2[%c0_4, %c0_5] : memref<8x1xi32, #tpu.memory_space<vmem>>, vector<8x1xi32>
    %c0_6 = arith.constant 0 : index
    %c0_7 = arith.constant 0 : index
    %6 = vector.load %arg8[%c0_6, %c0_7] : memref<8x128xf32, #tpu.memory_space<vmem>>, vector<8x128xf32>
    %c8_i32 = arith.constant 8 : i32
    %7 = arith.muli %arg1, %c8_i32 : i32
    %8 = tpu.iota {dimensions = array<i32: 1>} : vector<8x8xi32>
    %9 = vector.broadcast %7 : i32 to vector<8x8xi32>
    %10 = arith.addi %9, %8 : vector<8x8xi32>
    %11 = vector.broadcast %5 : vector<8x1xi32> to vector<8x8xi32>
    %12 = arith.cmpi slt, %10, %11 : vector<8x8xi32>
    %13 = arith.extui %12 : vector<8x8xi1> to vector<8x8xi32>
    %14 = arith.sitofp %13 : vector<8x8xi32> to vector<8x8xf32>
    %c0_8 = arith.constant 0 : index
    %c0_9 = arith.constant 0 : index
    %c0_10 = arith.constant 0 : index
    %15 = vector.load %arg3[%c0_8, %c0_9, %c0_10] : memref<8x8x128xf32, #tpu.memory_space<vmem>>, vector<1x8x128xf32>
    %16 = vector.shape_cast %15 : vector<1x8x128xf32> to vector<8x128xf32>
    %17 = arith.truncf %6 : vector<8x128xf32> to vector<8x128xbf16>
    %cst = arith.constant dense<0.000000e+00> : vector<8x128xf32>
    %18 = tpu.matmul %17, %3, %cst {dimension_numbers = #tpu.dot_dimension_numbers<[1], [0], [0], [1], [0, 0, 1, 1], [], []>} : vector<8x128xbf16>, vector<128x128xbf16>, vector<8x128xf32> -> vector<8x128xf32>
    %19 = vector.broadcast %4 : vector<1x128xf32> to vector<8x128xf32>
    %20 = arith.addf %18, %19 : vector<8x128xf32>
    %21 = arith.addf %16, %20 : vector<8x128xf32>
    %22 = arith.negf %21 : vector<8x128xf32>
    %23 = math.exp %22 : vector<8x128xf32>
    %cst_11 = arith.constant 1.000000e+00 : f32
    %24 = vector.broadcast %cst_11 : f32 to vector<8x128xf32>
    %25 = arith.addf %24, %23 : vector<8x128xf32>
    %26 = arith.divf %24, %25 : vector<8x128xf32>
    %27 = arith.subf %16, %20 : vector<8x128xf32>
    %28 = arith.negf %27 : vector<8x128xf32>
    %29 = math.exp %28 : vector<8x128xf32>
    %cst_12 = arith.constant 1.000000e+00 : f32
    %30 = vector.broadcast %cst_12 : f32 to vector<8x128xf32>
    %31 = arith.addf %30, %29 : vector<8x128xf32>
    %32 = arith.divf %30, %31 : vector<8x128xf32>
    %33 = arith.mulf %26, %16 : vector<8x128xf32>
    %34 = arith.mulf %32, %6 : vector<8x128xf32>
    %35 = arith.addf %33, %34 : vector<8x128xf32>
    %36 = vector.extract_strided_slice %14 {offsets = [0, 0], sizes = [8, 1], strides = [1, 1]} : vector<8x8xf32> to vector<8x1xf32>
    %37 = arith.subf %35, %6 : vector<8x128xf32>
    %38 = vector.broadcast %36 : vector<8x1xf32> to vector<8x128xf32>
    %39 = arith.mulf %38, %37 : vector<8x128xf32>
    %40 = arith.addf %6, %39 : vector<8x128xf32>
    %41 = vector.broadcast %36 : vector<8x1xf32> to vector<8x128xf32>
    %42 = arith.mulf %41, %35 : vector<8x128xf32>
    %c0_13 = arith.constant 0 : index
    %c0_14 = arith.constant 0 : index
    %c0_15 = arith.constant 0 : index
    %43 = vector.load %arg6[%c0_13, %c0_14, %c0_15] : memref<8x8x128xf32, #tpu.memory_space<vmem>>, vector<1x8x128xf32>
    %44 = vector.shape_cast %43 : vector<1x8x128xf32> to vector<8x128xf32>
    %45 = vector.shape_cast %42 : vector<8x128xf32> to vector<1x8x128xf32>
    tpu.vector_store %arg6[%c0_13, %c0_14, %c0_15], %45 {strides = array<i32>} : memref<8x8x128xf32, #tpu.memory_space<vmem>>, vector<1x8x128xf32>,
    %c1 = arith.constant 1 : index
    %c0_16 = arith.constant 0 : index
    %c0_17 = arith.constant 0 : index
    %46 = vector.load %arg3[%c1, %c0_16, %c0_17] : memref<8x8x128xf32, #tpu.memory_space<vmem>>, vector<1x8x128xf32>
    %47 = vector.shape_cast %46 : vector<1x8x128xf32> to vector<8x128xf32>
    %48 = arith.truncf %40 : vector<8x128xf32> to vector<8x128xbf16>
    %cst_18 = arith.constant dense<0.000000e+00> : vector<8x128xf32>
    %49 = tpu.matmul %48, %3, %cst_18 {dimension_numbers = #tpu.dot_dimension_numbers<[1], [0], [0], [1], [0, 0, 1, 1], [], []>} : vector<8x128xbf16>, vector<128x128xbf16>, vector<8x128xf32> -> vector<8x128xf32>
    %50 = vector.broadcast %4 : vector<1x128xf32> to vector<8x128xf32>
    %51 = arith.addf %49, %50 : vector<8x128xf32>
    %52 = arith.addf %47, %51 : vector<8x128xf32>
    %53 = arith.negf %52 : vector<8x128xf32>
    %54 = math.exp %53 : vector<8x128xf32>
    %cst_19 = arith.constant 1.000000e+00 : f32
    %55 = vector.broadcast %cst_19 : f32 to vector<8x128xf32>
    %56 = arith.addf %55, %54 : vector<8x128xf32>
    %57 = arith.divf %55, %56 : vector<8x128xf32>
    %58 = arith.subf %47, %51 : vector<8x128xf32>
    %59 = arith.negf %58 : vector<8x128xf32>
    %60 = math.exp %59 : vector<8x128xf32>
    %cst_20 = arith.constant 1.000000e+00 : f32
    %61 = vector.broadcast %cst_20 : f32 to vector<8x128xf32>
    %62 = arith.addf %61, %60 : vector<8x128xf32>
    %63 = arith.divf %61, %62 : vector<8x128xf32>
    %64 = arith.mulf %57, %47 : vector<8x128xf32>
    %65 = arith.mulf %63, %40 : vector<8x128xf32>
    %66 = arith.addf %64, %65 : vector<8x128xf32>
    %67 = vector.extract_strided_slice %14 {offsets = [0, 1], sizes = [8, 1], strides = [1, 1]} : vector<8x8xf32> to vector<8x1xf32>
    %68 = arith.subf %66, %40 : vector<8x128xf32>
    %69 = vector.broadcast %67 : vector<8x1xf32> to vector<8x128xf32>
    %70 = arith.mulf %69, %68 : vector<8x128xf32>
    %71 = arith.addf %40, %70 : vector<8x128xf32>
    %72 = vector.broadcast %67 : vector<8x1xf32> to vector<8x128xf32>
    %73 = arith.mulf %72, %66 : vector<8x128xf32>
    %c1_21 = arith.constant 1 : index
    %c0_22 = arith.constant 0 : index
    %c0_23 = arith.constant 0 : index
    %74 = vector.load %arg6[%c1_21, %c0_22, %c0_23] : memref<8x8x128xf32, #tpu.memory_space<vmem>>, vector<1x8x128xf32>
    %75 = vector.shape_cast %74 : vector<1x8x128xf32> to vector<8x128xf32>
    %76 = vector.shape_cast %73 : vector<8x128xf32> to vector<1x8x128xf32>
    tpu.vector_store %arg6[%c1_21, %c0_22, %c0_23], %76 {strides = array<i32>} : memref<8x8x128xf32, #tpu.memory_space<vmem>>, vector<1x8x128xf32>,
    %c2 = arith.constant 2 : index
    %c0_24 = arith.constant 0 : index
    %c0_25 = arith.constant 0 : index
    %77 = vector.load %arg3[%c2, %c0_24, %c0_25] : memref<8x8x128xf32, #tpu.memory_space<vmem>>, vector<1x8x128xf32>
    %78 = vector.shape_cast %77 : vector<1x8x128xf32> to vector<8x128xf32>
    %79 = arith.truncf %71 : vector<8x128xf32> to vector<8x128xbf16>
    %cst_26 = arith.constant dense<0.000000e+00> : vector<8x128xf32>
    %80 = tpu.matmul %79, %3, %cst_26 {dimension_numbers = #tpu.dot_dimension_numbers<[1], [0], [0], [1], [0, 0, 1, 1], [], []>} : vector<8x128xbf16>, vector<128x128xbf16>, vector<8x128xf32> -> vector<8x128xf32>
    %81 = vector.broadcast %4 : vector<1x128xf32> to vector<8x128xf32>
    %82 = arith.addf %80, %81 : vector<8x128xf32>
    %83 = arith.addf %78, %82 : vector<8x128xf32>
    %84 = arith.negf %83 : vector<8x128xf32>
    %85 = math.exp %84 : vector<8x128xf32>
    %cst_27 = arith.constant 1.000000e+00 : f32
    %86 = vector.broadcast %cst_27 : f32 to vector<8x128xf32>
    %87 = arith.addf %86, %85 : vector<8x128xf32>
    %88 = arith.divf %86, %87 : vector<8x128xf32>
    %89 = arith.subf %78, %82 : vector<8x128xf32>
    %90 = arith.negf %89 : vector<8x128xf32>
    %91 = math.exp %90 : vector<8x128xf32>
    %cst_28 = arith.constant 1.000000e+00 : f32
    %92 = vector.broadcast %cst_28 : f32 to vector<8x128xf32>
    %93 = arith.addf %92, %91 : vector<8x128xf32>
    %94 = arith.divf %92, %93 : vector<8x128xf32>
    %95 = arith.mulf %88, %78 : vector<8x128xf32>
    %96 = arith.mulf %94, %71 : vector<8x128xf32>
    %97 = arith.addf %95, %96 : vector<8x128xf32>
    %98 = vector.extract_strided_slice %14 {offsets = [0, 2], sizes = [8, 1], strides = [1, 1]} : vector<8x8xf32> to vector<8x1xf32>
    %99 = arith.subf %97, %71 : vector<8x128xf32>
    %100 = vector.broadcast %98 : vector<8x1xf32> to vector<8x128xf32>
    %101 = arith.mulf %100, %99 : vector<8x128xf32>
    %102 = arith.addf %71, %101 : vector<8x128xf32>
    %103 = vector.broadcast %98 : vector<8x1xf32> to vector<8x128xf32>
    %104 = arith.mulf %103, %97 : vector<8x128xf32>
    %c2_29 = arith.constant 2 : index
    %c0_30 = arith.constant 0 : index
    %c0_31 = arith.constant 0 : index
    %105 = vector.load %arg6[%c2_29, %c0_30, %c0_31] : memref<8x8x128xf32, #tpu.memory_space<vmem>>, vector<1x8x128xf32>
    %106 = vector.shape_cast %105 : vector<1x8x128xf32> to vector<8x128xf32>
    %107 = vector.shape_cast %104 : vector<8x128xf32> to vector<1x8x128xf32>
    tpu.vector_store %arg6[%c2_29, %c0_30, %c0_31], %107 {strides = array<i32>} : memref<8x8x128xf32, #tpu.memory_space<vmem>>, vector<1x8x128xf32>,
    %c3 = arith.constant 3 : index
    %c0_32 = arith.constant 0 : index
    %c0_33 = arith.constant 0 : index
    %108 = vector.load %arg3[%c3, %c0_32, %c0_33] : memref<8x8x128xf32, #tpu.memory_space<vmem>>, vector<1x8x128xf32>
    %109 = vector.shape_cast %108 : vector<1x8x128xf32> to vector<8x128xf32>
    %110 = arith.truncf %102 : vector<8x128xf32> to vector<8x128xbf16>
    %cst_34 = arith.constant dense<0.000000e+00> : vector<8x128xf32>
    %111 = tpu.matmul %110, %3, %cst_34 {dimension_numbers = #tpu.dot_dimension_numbers<[1], [0], [0], [1], [0, 0, 1, 1], [], []>} : vector<8x128xbf16>, vector<128x128xbf16>, vector<8x128xf32> -> vector<8x128xf32>
    %112 = vector.broadcast %4 : vector<1x128xf32> to vector<8x128xf32>
    %113 = arith.addf %111, %112 : vector<8x128xf32>
    %114 = arith.addf %109, %113 : vector<8x128xf32>
    %115 = arith.negf %114 : vector<8x128xf32>
    %116 = math.exp %115 : vector<8x128xf32>
    %cst_35 = arith.constant 1.000000e+00 : f32
    %117 = vector.broadcast %cst_35 : f32 to vector<8x128xf32>
    %118 = arith.addf %117, %116 : vector<8x128xf32>
    %119 = arith.divf %117, %118 : vector<8x128xf32>
    %120 = arith.subf %109, %113 : vector<8x128xf32>
    %121 = arith.negf %120 : vector<8x128xf32>
    %122 = math.exp %121 : vector<8x128xf32>
    %cst_36 = arith.constant 1.000000e+00 : f32
    %123 = vector.broadcast %cst_36 : f32 to vector<8x128xf32>
    %124 = arith.addf %123, %122 : vector<8x128xf32>
    %125 = arith.divf %123, %124 : vector<8x128xf32>
    %126 = arith.mulf %119, %109 : vector<8x128xf32>
    %127 = arith.mulf %125, %102 : vector<8x128xf32>
    %128 = arith.addf %126, %127 : vector<8x128xf32>
    %129 = vector.extract_strided_slice %14 {offsets = [0, 3], sizes = [8, 1], strides = [1, 1]} : vector<8x8xf32> to vector<8x1xf32>
    %130 = arith.subf %128, %102 : vector<8x128xf32>
    %131 = vector.broadcast %129 : vector<8x1xf32> to vector<8x128xf32>
    %132 = arith.mulf %131, %130 : vector<8x128xf32>
    %133 = arith.addf %102, %132 : vector<8x128xf32>
    %134 = vector.broadcast %129 : vector<8x1xf32> to vector<8x128xf32>
    %135 = arith.mulf %134, %128 : vector<8x128xf32>
    %c3_37 = arith.constant 3 : index
    %c0_38 = arith.constant 0 : index
    %c0_39 = arith.constant 0 : index
    %136 = vector.load %arg6[%c3_37, %c0_38, %c0_39] : memref<8x8x128xf32, #tpu.memory_space<vmem>>, vector<1x8x128xf32>
    %137 = vector.shape_cast %136 : vector<1x8x128xf32> to vector<8x128xf32>
    %138 = vector.shape_cast %135 : vector<8x128xf32> to vector<1x8x128xf32>
    tpu.vector_store %arg6[%c3_37, %c0_38, %c0_39], %138 {strides = array<i32>} : memref<8x8x128xf32, #tpu.memory_space<vmem>>, vector<1x8x128xf32>,
    %c4 = arith.constant 4 : index
    %c0_40 = arith.constant 0 : index
    %c0_41 = arith.constant 0 : index
    %139 = vector.load %arg3[%c4, %c0_40, %c0_41] : memref<8x8x128xf32, #tpu.memory_space<vmem>>, vector<1x8x128xf32>
    %140 = vector.shape_cast %139 : vector<1x8x128xf32> to vector<8x128xf32>
    %141 = arith.truncf %133 : vector<8x128xf32> to vector<8x128xbf16>
    %cst_42 = arith.constant dense<0.000000e+00> : vector<8x128xf32>
    %142 = tpu.matmul %141, %3, %cst_42 {dimension_numbers = #tpu.dot_dimension_numbers<[1], [0], [0], [1], [0, 0, 1, 1], [], []>} : vector<8x128xbf16>, vector<128x128xbf16>, vector<8x128xf32> -> vector<8x128xf32>
    %143 = vector.broadcast %4 : vector<1x128xf32> to vector<8x128xf32>
    %144 = arith.addf %142, %143 : vector<8x128xf32>
    %145 = arith.addf %140, %144 : vector<8x128xf32>
    %146 = arith.negf %145 : vector<8x128xf32>
    %147 = math.exp %146 : vector<8x128xf32>
    %cst_43 = arith.constant 1.000000e+00 : f32
    %148 = vector.broadcast %cst_43 : f32 to vector<8x128xf32>
    %149 = arith.addf %148, %147 : vector<8x128xf32>
    %150 = arith.divf %148, %149 : vector<8x128xf32>
    %151 = arith.subf %140, %144 : vector<8x128xf32>
    %152 = arith.negf %151 : vector<8x128xf32>
    %153 = math.exp %152 : vector<8x128xf32>
    %cst_44 = arith.constant 1.000000e+00 : f32
    %154 = vector.broadcast %cst_44 : f32 to vector<8x128xf32>
    %155 = arith.addf %154, %153 : vector<8x128xf32>
    %156 = arith.divf %154, %155 : vector<8x128xf32>
    %157 = arith.mulf %150, %140 : vector<8x128xf32>
    %158 = arith.mulf %156, %133 : vector<8x128xf32>
    %159 = arith.addf %157, %158 : vector<8x128xf32>
    %160 = vector.extract_strided_slice %14 {offsets = [0, 4], sizes = [8, 1], strides = [1, 1]} : vector<8x8xf32> to vector<8x1xf32>
    %161 = arith.subf %159, %133 : vector<8x128xf32>
    %162 = vector.broadcast %160 : vector<8x1xf32> to vector<8x128xf32>
    %163 = arith.mulf %162, %161 : vector<8x128xf32>
    %164 = arith.addf %133, %163 : vector<8x128xf32>
    %165 = vector.broadcast %160 : vector<8x1xf32> to vector<8x128xf32>
    %166 = arith.mulf %165, %159 : vector<8x128xf32>
    %c4_45 = arith.constant 4 : index
    %c0_46 = arith.constant 0 : index
    %c0_47 = arith.constant 0 : index
    %167 = vector.load %arg6[%c4_45, %c0_46, %c0_47] : memref<8x8x128xf32, #tpu.memory_space<vmem>>, vector<1x8x128xf32>
    %168 = vector.shape_cast %167 : vector<1x8x128xf32> to vector<8x128xf32>
    %169 = vector.shape_cast %166 : vector<8x128xf32> to vector<1x8x128xf32>
    tpu.vector_store %arg6[%c4_45, %c0_46, %c0_47], %169 {strides = array<i32>} : memref<8x8x128xf32, #tpu.memory_space<vmem>>, vector<1x8x128xf32>,
    %c5 = arith.constant 5 : index
    %c0_48 = arith.constant 0 : index
    %c0_49 = arith.constant 0 : index
    %170 = vector.load %arg3[%c5, %c0_48, %c0_49] : memref<8x8x128xf32, #tpu.memory_space<vmem>>, vector<1x8x128xf32>
    %171 = vector.shape_cast %170 : vector<1x8x128xf32> to vector<8x128xf32>
    %172 = arith.truncf %164 : vector<8x128xf32> to vector<8x128xbf16>
    %cst_50 = arith.constant dense<0.000000e+00> : vector<8x128xf32>
    %173 = tpu.matmul %172, %3, %cst_50 {dimension_numbers = #tpu.dot_dimension_numbers<[1], [0], [0], [1], [0, 0, 1, 1], [], []>} : vector<8x128xbf16>, vector<128x128xbf16>, vector<8x128xf32> -> vector<8x128xf32>
    %174 = vector.broadcast %4 : vector<1x128xf32> to vector<8x128xf32>
    %175 = arith.addf %173, %174 : vector<8x128xf32>
    %176 = arith.addf %171, %175 : vector<8x128xf32>
    %177 = arith.negf %176 : vector<8x128xf32>
    %178 = math.exp %177 : vector<8x128xf32>
    %cst_51 = arith.constant 1.000000e+00 : f32
    %179 = vector.broadcast %cst_51 : f32 to vector<8x128xf32>
    %180 = arith.addf %179, %178 : vector<8x128xf32>
    %181 = arith.divf %179, %180 : vector<8x128xf32>
    %182 = arith.subf %171, %175 : vector<8x128xf32>
    %183 = arith.negf %182 : vector<8x128xf32>
    %184 = math.exp %183 : vector<8x128xf32>
    %cst_52 = arith.constant 1.000000e+00 : f32
    %185 = vector.broadcast %cst_52 : f32 to vector<8x128xf32>
    %186 = arith.addf %185, %184 : vector<8x128xf32>
    %187 = arith.divf %185, %186 : vector<8x128xf32>
    %188 = arith.mulf %181, %171 : vector<8x128xf32>
    %189 = arith.mulf %187, %164 : vector<8x128xf32>
    %190 = arith.addf %188, %189 : vector<8x128xf32>
    %191 = vector.extract_strided_slice %14 {offsets = [0, 5], sizes = [8, 1], strides = [1, 1]} : vector<8x8xf32> to vector<8x1xf32>
    %192 = arith.subf %190, %164 : vector<8x128xf32>
    %193 = vector.broadcast %191 : vector<8x1xf32> to vector<8x128xf32>
    %194 = arith.mulf %193, %192 : vector<8x128xf32>
    %195 = arith.addf %164, %194 : vector<8x128xf32>
    %196 = vector.broadcast %191 : vector<8x1xf32> to vector<8x128xf32>
    %197 = arith.mulf %196, %190 : vector<8x128xf32>
    %c5_53 = arith.constant 5 : index
    %c0_54 = arith.constant 0 : index
    %c0_55 = arith.constant 0 : index
    %198 = vector.load %arg6[%c5_53, %c0_54, %c0_55] : memref<8x8x128xf32, #tpu.memory_space<vmem>>, vector<1x8x128xf32>
    %199 = vector.shape_cast %198 : vector<1x8x128xf32> to vector<8x128xf32>
    %200 = vector.shape_cast %197 : vector<8x128xf32> to vector<1x8x128xf32>
    tpu.vector_store %arg6[%c5_53, %c0_54, %c0_55], %200 {strides = array<i32>} : memref<8x8x128xf32, #tpu.memory_space<vmem>>, vector<1x8x128xf32>,
    %c6 = arith.constant 6 : index
    %c0_56 = arith.constant 0 : index
    %c0_57 = arith.constant 0 : index
    %201 = vector.load %arg3[%c6, %c0_56, %c0_57] : memref<8x8x128xf32, #tpu.memory_space<vmem>>, vector<1x8x128xf32>
    %202 = vector.shape_cast %201 : vector<1x8x128xf32> to vector<8x128xf32>
    %203 = arith.truncf %195 : vector<8x128xf32> to vector<8x128xbf16>
    %cst_58 = arith.constant dense<0.000000e+00> : vector<8x128xf32>
    %204 = tpu.matmul %203, %3, %cst_58 {dimension_numbers = #tpu.dot_dimension_numbers<[1], [0], [0], [1], [0, 0, 1, 1], [], []>} : vector<8x128xbf16>, vector<128x128xbf16>, vector<8x128xf32> -> vector<8x128xf32>
    %205 = vector.broadcast %4 : vector<1x128xf32> to vector<8x128xf32>
    %206 = arith.addf %204, %205 : vector<8x128xf32>
    %207 = arith.addf %202, %206 : vector<8x128xf32>
    %208 = arith.negf %207 : vector<8x128xf32>
    %209 = math.exp %208 : vector<8x128xf32>
    %cst_59 = arith.constant 1.000000e+00 : f32
    %210 = vector.broadcast %cst_59 : f32 to vector<8x128xf32>
    %211 = arith.addf %210, %209 : vector<8x128xf32>
    %212 = arith.divf %210, %211 : vector<8x128xf32>
    %213 = arith.subf %202, %206 : vector<8x128xf32>
    %214 = arith.negf %213 : vector<8x128xf32>
    %215 = math.exp %214 : vector<8x128xf32>
    %cst_60 = arith.constant 1.000000e+00 : f32
    %216 = vector.broadcast %cst_60 : f32 to vector<8x128xf32>
    %217 = arith.addf %216, %215 : vector<8x128xf32>
    %218 = arith.divf %216, %217 : vector<8x128xf32>
    %219 = arith.mulf %212, %202 : vector<8x128xf32>
    %220 = arith.mulf %218, %195 : vector<8x128xf32>
    %221 = arith.addf %219, %220 : vector<8x128xf32>
    %222 = vector.extract_strided_slice %14 {offsets = [0, 6], sizes = [8, 1], strides = [1, 1]} : vector<8x8xf32> to vector<8x1xf32>
    %223 = arith.subf %221, %195 : vector<8x128xf32>
    %224 = vector.broadcast %222 : vector<8x1xf32> to vector<8x128xf32>
    %225 = arith.mulf %224, %223 : vector<8x128xf32>
    %226 = arith.addf %195, %225 : vector<8x128xf32>
    %227 = vector.broadcast %222 : vector<8x1xf32> to vector<8x128xf32>
    %228 = arith.mulf %227, %221 : vector<8x128xf32>
    %c6_61 = arith.constant 6 : index
    %c0_62 = arith.constant 0 : index
    %c0_63 = arith.constant 0 : index
    %229 = vector.load %arg6[%c6_61, %c0_62, %c0_63] : memref<8x8x128xf32, #tpu.memory_space<vmem>>, vector<1x8x128xf32>
    %230 = vector.shape_cast %229 : vector<1x8x128xf32> to vector<8x128xf32>
    %231 = vector.shape_cast %228 : vector<8x128xf32> to vector<1x8x128xf32>
    tpu.vector_store %arg6[%c6_61, %c0_62, %c0_63], %231 {strides = array<i32>} : memref<8x8x128xf32, #tpu.memory_space<vmem>>, vector<1x8x128xf32>,
    %c7 = arith.constant 7 : index
    %c0_64 = arith.constant 0 : index
    %c0_65 = arith.constant 0 : index
    %232 = vector.load %arg3[%c7, %c0_64, %c0_65] : memref<8x8x128xf32, #tpu.memory_space<vmem>>, vector<1x8x128xf32>
    %233 = vector.shape_cast %232 : vector<1x8x128xf32> to vector<8x128xf32>
    %234 = arith.truncf %226 : vector<8x128xf32> to vector<8x128xbf16>
    %cst_66 = arith.constant dense<0.000000e+00> : vector<8x128xf32>
    %235 = tpu.matmul %234, %3, %cst_66 {dimension_numbers = #tpu.dot_dimension_numbers<[1], [0], [0], [1], [0, 0, 1, 1], [], []>} : vector<8x128xbf16>, vector<128x128xbf16>, vector<8x128xf32> -> vector<8x128xf32>
    %236 = vector.broadcast %4 : vector<1x128xf32> to vector<8x128xf32>
    %237 = arith.addf %235, %236 : vector<8x128xf32>
    %238 = arith.addf %233, %237 : vector<8x128xf32>
    %239 = arith.negf %238 : vector<8x128xf32>
    %240 = math.exp %239 : vector<8x128xf32>
    %cst_67 = arith.constant 1.000000e+00 : f32
    %241 = vector.broadcast %cst_67 : f32 to vector<8x128xf32>
    %242 = arith.addf %241, %240 : vector<8x128xf32>
    %243 = arith.divf %241, %242 : vector<8x128xf32>
    %244 = arith.subf %233, %237 : vector<8x128xf32>
    %245 = arith.negf %244 : vector<8x128xf32>
    %246 = math.exp %245 : vector<8x128xf32>
    %cst_68 = arith.constant 1.000000e+00 : f32
    %247 = vector.broadcast %cst_68 : f32 to vector<8x128xf32>
    %248 = arith.addf %247, %246 : vector<8x128xf32>
    %249 = arith.divf %247, %248 : vector<8x128xf32>
    %250 = arith.mulf %243, %233 : vector<8x128xf32>
    %251 = arith.mulf %249, %226 : vector<8x128xf32>
    %252 = arith.addf %250, %251 : vector<8x128xf32>
    %253 = vector.extract_strided_slice %14 {offsets = [0, 7], sizes = [8, 1], strides = [1, 1]} : vector<8x8xf32> to vector<8x1xf32>
    %254 = arith.subf %252, %226 : vector<8x128xf32>
    %255 = vector.broadcast %253 : vector<8x1xf32> to vector<8x128xf32>
    %256 = arith.mulf %255, %254 : vector<8x128xf32>
    %257 = arith.addf %226, %256 : vector<8x128xf32>
    %258 = vector.broadcast %253 : vector<8x1xf32> to vector<8x128xf32>
    %259 = arith.mulf %258, %252 : vector<8x128xf32>
    %c7_69 = arith.constant 7 : index
    %c0_70 = arith.constant 0 : index
    %c0_71 = arith.constant 0 : index
    %260 = vector.load %arg6[%c7_69, %c0_70, %c0_71] : memref<8x8x128xf32, #tpu.memory_space<vmem>>, vector<1x8x128xf32>
    %261 = vector.shape_cast %260 : vector<1x8x128xf32> to vector<8x128xf32>
    %262 = vector.shape_cast %259 : vector<8x128xf32> to vector<1x8x128xf32>
    tpu.vector_store %arg6[%c7_69, %c0_70, %c0_71], %262 {strides = array<i32>} : memref<8x8x128xf32, #tpu.memory_space<vmem>>, vector<1x8x128xf32>,
    %c0_72 = arith.constant 0 : index
    %c0_73 = arith.constant 0 : index
    %263 = vector.load %arg8[%c0_72, %c0_73] : memref<8x128xf32, #tpu.memory_space<vmem>>, vector<8x128xf32>
    tpu.vector_store %arg8[%c0_72, %c0_73], %257 {strides = array<i32>} : memref<8x128xf32, #tpu.memory_space<vmem>>, vector<8x128xf32>,
    %c0_i32_74 = arith.constant 0 : i32
    %264 = arith.cmpi eq, %arg1, %c0_i32_74 : i32
    %265 = arith.extui %264 : i1 to i32
    %c0_i32_75 = arith.constant 0 : i32
    %266 = arith.cmpi ne, %265, %c0_i32_75 : i32
    scf.if %266 {
      %c0_76 = arith.constant 0 : index
      %c0_77 = arith.constant 0 : index
      %267 = vector.load %arg7[%c0_76, %c0_77] : memref<8x128xf32, #tpu.memory_space<vmem>>, vector<8x128xf32>
      tpu.vector_store %arg7[%c0_76, %c0_77], %257 {strides = array<i32>} : memref<8x128xf32, #tpu.memory_space<vmem>>, vector<8x128xf32>,
    } else {
    }
    return
  }
  func.func @transform_0(%arg0: i32, %arg1: i32) -> (i32, i32) {
    %c0_i32 = arith.constant 0 : i32
    %c0_i32_0 = arith.constant 0 : i32
    return %arg0, %c0_i32 : i32, i32
  }
  func.func @transform_1(%arg0: i32, %arg1: i32) -> (i32, i32, i32) {
    %c0_i32 = arith.constant 0 : i32
    %c0_i32_0 = arith.constant 0 : i32
    return %arg1, %arg0, %c0_i32 : i32, i32, i32
  }
  func.func @transform_2(%arg0: i32, %arg1: i32) -> (i32, i32) {
    %c0_i32 = arith.constant 0 : i32
    %c0_i32_0 = arith.constant 0 : i32
    %c0_i32_1 = arith.constant 0 : i32
    return %c0_i32, %c0_i32_0 : i32, i32
  }
  func.func @transform_3(%arg0: i32, %arg1: i32) -> (i32, i32) {
    %c0_i32 = arith.constant 0 : i32
    %c0_i32_0 = arith.constant 0 : i32
    %c0_i32_1 = arith.constant 0 : i32
    return %c0_i32, %c0_i32_0 : i32, i32
  }
  func.func @transform_4(%arg0: i32, %arg1: i32) -> (i32, i32, i32) {
    %c0_i32 = arith.constant 0 : i32
    %c0_i32_0 = arith.constant 0 : i32
    return %arg1, %arg0, %c0_i32 : i32, i32, i32
  }
  func.func @transform_5(%arg0: i32, %arg1: i32) -> (i32, i32) {
    %c0_i32 = arith.constant 0 : i32
    %c0_i32_0 = arith.constant 0 : i32
    return %arg0, %c0_i32 : i32, i32
  }
}

</mosaic_0001>

<bundles_post_ra>
// kernel: tpu_custom_call.1
= control target key start
LH: loop header
LB: loop body
LE: loop exit
PB: predicated region body
PF: predicated region fallthrough
CT: control target
= control target key end

     0   :  { %11 = vsyncpa [#allocation4], 0  ;;  %s1425_s0 = inlined_call_operand.vmem [shape: s32[8,1], index: 0, kind: input, shape index: {}]   ;;  %s1426_s1 = inlined_call_operand.hbm [shape: f32[8,8,128], index: 1, kind: input, shape index: {}]   ;;  %s1427_s2 = inlined_call_operand.hbm [shape: bf16[128,128], index: 2, kind: input, shape index: {}]   ;;  %s1428_s3 = inlined_call_operand.vmem [shape: f32[1,128], index: 3, kind: input, shape index: {}]   ;;  %s1429_s4 = inlined_call_operand.hbm [shape: f32[8,8,128], index: 4, kind: output, shape index: {0}]   ;;  %s1430_s5 = inlined_call_operand.hbm [shape: f32[8,128], index: 5, kind: output, shape index: {1}]  }
   0x1   :  { %12 = vsyncpa [#allocation7], 0 }
   0x2   :  { %13 = vsyncpa [#allocation5], 0 }
   0x3   :  { %14 = vsyncpa [#allocation10], 0  ;;  %s1181_s18 = smov [#allocation3]  }
   0x4   :  { %s22_s19 = sshll.u32 %s1181_s18, 4  ;;  %s23_s19 = int_to_ptr.vmem [resolvable:$true] %s22_s19 }
   0x5   :  { %s1101_s20 = scalar_lea.vmem %s23_s19, 1024  ;;  %p1106_p1 = scmp.lt.s32.totalorder %s23_s19, %s23_s19 }
   0x6   :  { %p1102_p0 = scmp.ne.s32.totalorder %s23_s19, %s1101_s20  ;;  %p1107_p2 = scmp.lt.s32.totalorder %s1101_s20, %s1101_s20 }
   0x8   :  { %p1108_p3 = por %p1107_p2, %p1106_p1 }
   0xa   :  { %p1109_p4 = pnand %p1108_p3, %p1102_p0 }
   0xc   :  { %1112 = shalt.err (!%p1109_p4)
}
   0xd   :  { %s1182_s21 = smov 128   ;;  %s1183_s22 = smov 8  }
   0xe   :  { %28 = dma.hbm_to_vmem [thread:$0]  %s1426_s1, 1024, %s23_s19, [#allocation4], %s1182_s21, %s1182_s21, %s1183_s22  }
   0xf   :  { %s1184_s25 = smov [#allocation6]  }
  0x10   :  { %s34_s26 = sshll.u32 %s1184_s25, 4  ;;  %s35_s26 = int_to_ptr.vmem [resolvable:$true] %s34_s26 }
  0x11   :  { %s1121_s27 = scalar_lea.vmem %s35_s26, 1024  ;;  %p1126_p6 = scmp.lt.s32.totalorder %s35_s26, %s35_s26 }
  0x12   :  { %p1122_p5 = scmp.ne.s32.totalorder %s35_s26, %s1121_s27  ;;  %p1127_p7 = scmp.lt.s32.totalorder %s1121_s27, %s1121_s27 }
  0x14   :  { %p1128_p8 = por %p1127_p7, %p1126_p6 }
  0x16   :  { %p1129_p9 = pnand %p1128_p8, %p1122_p5 }
  0x18   :  { %1132 = shalt.err (!%p1129_p9)
}
  0x19   :  { %s1185_s28 = smov 64   ;;  %s1186_s29 = smov 4  }
  0x1a   :  { %40 = dma.hbm_to_vmem [thread:$0]  %s1427_s2, 1024, %s35_s26, [#allocation7], %s1185_s28, %s1185_s28, %s1186_s29  }
  0x1b   :  { %1173 = dma.done.wait [#allocation4], 1024  }
  0x1c   :  { %1174 = vsyncadd [#allocation4], 4294966272 }
  0x1d   :  { %1175 = dma.done.wait [#allocation7], 1024  }
  0x1e   :  { %1176 = vsyncadd [#allocation7], 4294966272  ;;  %v1187_v0 = vmov 0   ;;  %v1188_v1 = vmov 0.0   ;;  %vm1189_vm0 = vmmov 0   ;;  %v1190_v2 = vmov 1  }
  0x1f   :  { %1012 = vset.pattern.permute.xlu0 %v1187_v0  ;;  %833 = vmatprep.subr.bf16.mxu0 %v1188_v1  ;;  %v72_v3 = vld [vmem:[%s1425_s0] sm:$0xff]  ;;  %v1248_v4 = vld [vmem:[#allocation6 + $0x38] sm:$0xff]   ;;  %v1251_v5 = vld [vmem:[#allocation6 + $0x30] sm:$0xff]   ;;  %v1191_v12 = vmov 0.0|0.0   ;;  %v75_v13 = vlaneseq  ;;  %v1192_v17 = vmov 2   ;;  %v1193_v18 = vmov 3  }
  0x20   :  { %849 = vmatprep.mubr.msk.bf16.mxu0 %vm1189_vm0, %v1188_v1  ;;  %853 = vmatprep.subr.bf16.mxu1 %v1188_v1  ;;  %v1257_v6 = vld [vmem:[#allocation6 + $0x28] sm:$0xff]   ;;  %v1263_v7 = vld [vmem:[#allocation6 + $0x20] sm:$0xff]   ;;  %v1269_v8 = vld [vmem:[#allocation6 + $0x18] sm:$0xff]   ;;  %v1194_v19 = vmov 4   ;;  %v1195_v20 = vmov 6   ;;  %v1196_v21 = vmov 5  }
  0x21   :  { %869 = vmatprep.mubr.msk.bf16.mxu1 %vm1189_vm0, %v1188_v1  ;;  %1013 = vset.pattern.permute.xlu1 %v1190_v2  ;;  %v1275_v9 = vld [vmem:[#allocation6 + $0x10] sm:$0xff]   ;;  %v1281_v10 = vld [vmem:[#allocation6 + $0x8] sm:$0xff]   ;;  %v1287_v11 = vld [vmem:[#allocation6] sm:$0xff]   ;;  %v76_v14 = vand.u32 127, %v75_v13  ;;  %v1197_v22 = vmov 7   ;;  %s1199_s9 = smov [#allocation9]  }
  0x22   :  { %80 = vperm.xlu0 %1012, %v72_v3   ;;  %834 = vmatpush3.bf16.msra.mxu0 %v1248_v4  ;;  %v1318_v23 = vld [vmem:[%s1428_s3] ss:$0 sm:$0xff]  ;;  %v209_v46 = vld [vmem:[#allocation3 + $0x8] sm:$0xff]  ;;  %s1198_s3 = smov [#allocation8]   ;;  %s721_s10 = sshll.u32 %s1199_s9, 4  ;;  %s722_s10 = int_to_ptr.vmem [resolvable:$true] %s721_s10 }
  0x23   :  { %854 = vmatpush3.bf16.msra.mxu1 %v1248_v4  ;;  %835 = vmatprep.subr.bf16.mxu0 %v1188_v1  ;;  %v85_v24 = vld [vmem:[#allocation3] sm:$0xff]  ;;  %s708_s8 = sshll.u32 %s1198_s3, 4  ;;  %s709_s8 = int_to_ptr.vmem [resolvable:$true] %s708_s8 }
  0x24   :  { %855 = vmatprep.subr.bf16.mxu1 %v1188_v1  ;;  %s1133_s11 = scalar_lea.vmem %s709_s8, 1024  ;;  %p1138_p11 = scmp.lt.s32.totalorder %s709_s8, %s709_s8 }
  0x25   :  { %p1134_p10 = scmp.ne.s32.totalorder %s709_s8, %s1133_s11  ;;  %p1139_p12 = scmp.lt.s32.totalorder %s1133_s11, %s1133_s11 }
  0x26   :  { %836 = vmatpush3.bf16.msra.mxu0 %v1251_v5 }
  0x27   :  { %856 = vmatpush3.bf16.msra.mxu1 %v1251_v5  ;;  %837 = vmatprep.subr.bf16.mxu0 %v1188_v1  ;;  %p1140_p13 = por %p1139_p12, %p1138_p11 }
  0x28   :  { %857 = vmatprep.subr.bf16.mxu1 %v1188_v1 }
  0x29   :  { %p1141_p0 = pnand %p1140_p13, %p1134_p10 }
  0x2a   :  { %838 = vmatpush3.bf16.msra.mxu0 %v1257_v6 }
  0x2b   :  { %858 = vmatpush3.bf16.msra.mxu1 %v1257_v6  ;;  %839 = vmatprep.subr.bf16.mxu0 %v1188_v1 }
  0x2c   :  { %859 = vmatprep.subr.bf16.mxu1 %v1188_v1 }
  0x2e   :  { %840 = vmatpush3.bf16.msra.mxu0 %v1263_v7 }
  0x2f   :  { %860 = vmatpush3.bf16.msra.mxu1 %v1263_v7  ;;  %841 = vmatprep.subr.bf16.mxu0 %v1188_v1 }
  0x30   :  { %861 = vmatprep.subr.bf16.mxu1 %v1188_v1 }
  0x32   :  { %842 = vmatpush3.bf16.msra.mxu0 %v1269_v8 }
  0x33   :  { %862 = vmatpush3.bf16.msra.mxu1 %v1269_v8  ;;  %843 = vmatprep.subr.bf16.mxu0 %v1188_v1 }
  0x34   :  { %863 = vmatprep.subr.bf16.mxu1 %v1188_v1 }
  0x36   :  { %844 = vmatpush3.bf16.msra.mxu0 %v1275_v9 }
  0x37   :  { %864 = vmatpush3.bf16.msra.mxu1 %v1275_v9  ;;  %845 = vmatprep.subr.bf16.mxu0 %v1188_v1 }
  0x38   :  { %865 = vmatprep.subr.bf16.mxu1 %v1188_v1 }
  0x3a   :  { %846 = vmatpush3.bf16.msra.mxu0 %v1281_v10 }
  0x3b   :  { %866 = vmatpush3.bf16.msra.mxu1 %v1281_v10  ;;  %847 = vmatprep.subr.bf16.mxu0 %v1188_v1 }
  0x3c   :  { %867 = vmatprep.subr.bf16.mxu1 %v1188_v1 }
  0x3e   :  { %848 = vmatpush3.bf16.msra.mxu0 %v1287_v11 }
  0x3f   :  { %868 = vmatpush3.bf16.msra.mxu1 %v1287_v11  ;;  %873 = vmatprep.subr.bf16.mxu0 %v1188_v1 }
  0x40   :  { %893 = vmatprep.subr.bf16.mxu1 %v1188_v1 }
  0x41   :  { %850 = vmatmul.mubr.bf16.vlgmr.msra.gmra.mxu0 %v1191_v12 }
  0x42   :  { %874 = vmatpush3.bf16.msra.mxu0 %v1248_v4  ;;  %889 = vmatprep.mubr.msk.bf16.mxu0 %vm1189_vm0, %v1188_v1 }
  0x43   :  { %875 = vmatprep.subr.bf16.mxu0 %v1188_v1 }
  0x46   :  { %876 = vmatpush3.bf16.msra.mxu0 %v1251_v5 }
  0x47   :  { %877 = vmatprep.subr.bf16.mxu0 %v1188_v1 }
  0x4a   :  { %878 = vmatpush3.bf16.msra.mxu0 %v1257_v6 }
  0x4b   :  { %879 = vmatprep.subr.bf16.mxu0 %v1188_v1 }
  0x4e   :  { %880 = vmatpush3.bf16.msra.mxu0 %v1263_v7 }
  0x4f   :  { %881 = vmatprep.subr.bf16.mxu0 %v1188_v1 }
  0x52   :  { %882 = vmatpush3.bf16.msra.mxu0 %v1269_v8 }
  0x53   :  { %883 = vmatprep.subr.bf16.mxu0 %v1188_v1 }
  0x56   :  { %884 = vmatpush3.bf16.msra.mxu0 %v1275_v9 }
  0x57   :  { %885 = vmatprep.subr.bf16.mxu0 %v1188_v1 }
  0x5a   :  { %886 = vmatpush3.bf16.msra.mxu0 %v1281_v10 }
  0x5b   :  { %887 = vmatprep.subr.bf16.mxu0 %v1188_v1 }
  0x5e   :  { %888 = vmatpush3.bf16.msra.mxu0 %v1287_v11 }
  0x5f   :  { %913 = vmatprep.subr.bf16.mxu0 %v1188_v1 }
  0x9d   :  { %v81_v15 = vpop.permute.xlu0 %80 }
  0x9e   :  { %vm82_vm1 = vcmp.lt.s32.totalorder %v76_v14, %v81_v15 }
  0x9f   :  { %v735_v16 = vsel %vm82_vm1, 1.0, %v1188_v1 }
  0xa0   :  { %270 = vperm.xlu1 %1013, %v735_v16   ;;  %201 = vperm.xlu0 %1012, %v735_v16  }
  0xa4   :  { %1014 = vset.pattern.permute.xlu1 %v1192_v17  ;;  %1015 = vset.pattern.permute.xlu0 %v1193_v18 }
  0xa5   :  { %340 = vperm.xlu1 %1014, %v735_v16   ;;  %410 = vperm.xlu0 %1015, %v735_v16  }
  0xa9   :  { %1016 = vset.pattern.permute.xlu1 %v1194_v19  ;;  %1018 = vset.pattern.permute.xlu0 %v1195_v20 }
  0xaa   :  { %480 = vperm.xlu1 %1016, %v735_v16   ;;  %620 = vperm.xlu0 %1018, %v735_v16  }
  0xae   :  { %1017 = vset.pattern.permute.xlu1 %v1196_v21  ;;  %1020 = vset.pattern.permute.xlu0 %v1197_v22 }
  0xaf   :  { %550 = vperm.xlu1 %1017, %v735_v16  }
  0xb3   :  { %1019 = vset.pattern.permute.xlu1 %v1197_v22 }
  0xb4   :  { %690 = vperm.xlu1 %1019, %v735_v16   ;;  %v279_v16 = vld [vmem:[#allocation3 + $0x10] sm:$0xff] }
 0x101   :  { %v175_v25 = vpop.f32.mrf.mxu0 }
 0x102   :  { %v176_v26 = vadd.f32 %v1318_v23, %v175_v25 }
 0x103   :  { %v851_v27 = vpop.f32.mrf.mxu0 }
 0x104   :  { %v181_v28 = vadd.f32 %v176_v26, %v85_v24  ;;  %v188_v29 = vsub.f32 %v85_v24, %v176_v26 }
 0x105   :  { %v178_v30 = vpop.f32.mrf.mxu0 }
 0x106   :  { %v745_v31 = vmul.f32 -1.442695, %v181_v28  ;;  %v746_v32 = vmul.f32 -1.442695, %v188_v29 }
 0x107   :  { %v852_v33 = vpop.f32.mrf.mxu0 }
 0x108   :  { %1029 = vpow2.f32 %v745_v31 }
 0x109   :  { %1031 = vpow2.f32 %v746_v32 }
 0x115   :  { %v1030_v34 = vpop.eup %1029 }
 0x116   :  { %v1032_v35 = vpop.eup %1031  ;;  %v185_v36 = vadd.f32 1.0, %v1030_v34 }
 0x117   :  { %v192_v37 = vadd.f32 1.0, %v1032_v35 }
 0x118   :  { %1033 = vrcp.f32 %v185_v36 }
 0x119   :  { %1035 = vrcp.f32 %v192_v37 }
 0x11b   :  { %v202_v43 = vpop.permute.xlu0 %201  ;;  %v271_v2 = vpop.permute.xlu1 %270 }
 0x120   :  { %v341_v36 = vpop.permute.xlu1 %340 }
 0x125   :  { %v1034_v38 = vpop.eup %1033 }
 0x126   :  { %v1036_v39 = vpop.eup %1035  ;;  %v195_v40 = vmul.f32 %v1034_v38, %v85_v24 }
 0x127   :  { %v196_v41 = vmul.f32 0.0, %v1036_v39 }
 0x129   :  { %v197_v42 = vadd.f32 %v196_v41, %v195_v40 }
 0x12b   :  { %v204_v44 = vmul.f32 %v202_v43, %v197_v42  ;;  %v349_v42 = vld [vmem:[#allocation3 + $0x18] sm:$0xff] }
 0x12d   :  { %207 = vst [vmem:[#allocation8] sm:$0xff] %v204_v44  ;;  %v210_v45 = vpack.c.bf16 %v204_v44, %v204_v44 }
 0x12f   :  { %870 = vmatmul.mubr.bf16.vlgmr.msra.gmra.mxu1 %v210_v45 }
 0x130   :  { %894 = vmatpush3.bf16.msra.mxu1 %v1248_v4  ;;  %909 = vmatprep.mubr.msk.bf16.mxu1 %vm1189_vm0, %v1188_v1 }
 0x131   :  { %895 = vmatprep.subr.bf16.mxu1 %v1188_v1 }
 0x134   :  { %896 = vmatpush3.bf16.msra.mxu1 %v1251_v5 }
 0x135   :  { %897 = vmatprep.subr.bf16.mxu1 %v1188_v1 }
 0x138   :  { %898 = vmatpush3.bf16.msra.mxu1 %v1257_v6 }
 0x139   :  { %899 = vmatprep.subr.bf16.mxu1 %v1188_v1 }
 0x13c   :  { %900 = vmatpush3.bf16.msra.mxu1 %v1263_v7 }
 0x13d   :  { %901 = vmatprep.subr.bf16.mxu1 %v1188_v1 }
 0x140   :  { %902 = vmatpush3.bf16.msra.mxu1 %v1269_v8 }
 0x141   :  { %903 = vmatprep.subr.bf16.mxu1 %v1188_v1 }
 0x144   :  { %904 = vmatpush3.bf16.msra.mxu1 %v1275_v9 }
 0x145   :  { %905 = vmatprep.subr.bf16.mxu1 %v1188_v1 }
 0x148   :  { %906 = vmatpush3.bf16.msra.mxu1 %v1281_v10 }
 0x149   :  { %907 = vmatprep.subr.bf16.mxu1 %v1188_v1 }
 0x14c   :  { %908 = vmatpush3.bf16.msra.mxu1 %v1287_v11 }
 0x14d   :  { %933 = vmatprep.subr.bf16.mxu1 %v1188_v1 }
 0x1ef   :  { %v245_v47 = vpop.f32.mrf.mxu1 }
 0x1f0   :  { %v246_v48 = vadd.f32 %v1318_v23, %v245_v47 }
 0x1f1   :  { %v871_v49 = vpop.f32.mrf.mxu1 }
 0x1f2   :  { %v251_v50 = vadd.f32 %v246_v48, %v209_v46  ;;  %v258_v51 = vsub.f32 %v209_v46, %v246_v48 }
 0x1f3   :  { %v248_v52 = vpop.f32.mrf.mxu1 }
 0x1f4   :  { %v747_v53 = vmul.f32 -1.442695, %v251_v50  ;;  %v748_v54 = vmul.f32 -1.442695, %v258_v51 }
 0x1f5   :  { %v872_v55 = vpop.f32.mrf.mxu1 }
 0x1f6   :  { %1037 = vpow2.f32 %v747_v53 }
 0x1f7   :  { %1039 = vpow2.f32 %v748_v54 }
 0x203   :  { %v1038_v56 = vpop.eup %1037 }
 0x204   :  { %v1040_v57 = vpop.eup %1039  ;;  %v255_v58 = vadd.f32 1.0, %v1038_v56 }
 0x205   :  { %v262_v59 = vadd.f32 1.0, %v1040_v57 }
 0x206   :  { %1041 = vrcp.f32 %v255_v58 }
 0x207   :  { %1043 = vrcp.f32 %v262_v59 }
 0x213   :  { %v1042_v60 = vpop.eup %1041 }
 0x214   :  { %v1044_v61 = vpop.eup %1043  ;;  %v265_v62 = vmul.f32 %v1042_v60, %v209_v46 }
 0x215   :  { %v266_v63 = vmul.f32 %v1044_v61, %v204_v44  ;;  %v411_v61 = vpop.permute.xlu0 %410 }
 0x217   :  { %v267_v0 = vadd.f32 %v266_v63, %v265_v62 }
 0x219   :  { %v268_v3 = vsub.f32 %v267_v0, %v204_v44  ;;  %v275_v12 = vmul.f32 %v271_v2, %v267_v0 }
 0x21b   :  { %v273_v13 = vmul.f32 %v271_v2, %v268_v3  ;;  %277 = vst [vmem:[#allocation8 + $0x8] sm:$0xff] %v275_v12  ;;  %v419_v12 = vld [vmem:[#allocation3 + $0x20] sm:$0xff] }
 0x21d   :  { %v274_v14 = vadd.f32 %v273_v13, %v204_v44 }
 0x21f   :  { %v280_v15 = vpack.c.bf16 %v274_v14, %v274_v14 }
 0x221   :  { %890 = vmatmul.mubr.bf16.vlgmr.msra.gmra.mxu0 %v280_v15 }
 0x222   :  { %914 = vmatpush3.bf16.msra.mxu0 %v1248_v4  ;;  %929 = vmatprep.mubr.msk.bf16.mxu0 %vm1189_vm0, %v1188_v1 }
 0x223   :  { %915 = vmatprep.subr.bf16.mxu0 %v1188_v1 }
 0x226   :  { %916 = vmatpush3.bf16.msra.mxu0 %v1251_v5 }
 0x227   :  { %917 = vmatprep.subr.bf16.mxu0 %v1188_v1 }
 0x22a   :  { %918 = vmatpush3.bf16.msra.mxu0 %v1257_v6 }
 0x22b   :  { %919 = vmatprep.subr.bf16.mxu0 %v1188_v1 }
 0x22e   :  { %920 = vmatpush3.bf16.msra.mxu0 %v1263_v7 }
 0x22f   :  { %921 = vmatprep.subr.bf16.mxu0 %v1188_v1 }
 0x232   :  { %922 = vmatpush3.bf16.msra.mxu0 %v1269_v8 }
 0x233   :  { %923 = vmatprep.subr.bf16.mxu0 %v1188_v1 }
 0x236   :  { %924 = vmatpush3.bf16.msra.mxu0 %v1275_v9 }
 0x237   :  { %925 = vmatprep.subr.bf16.mxu0 %v1188_v1 }
 0x23a   :  { %926 = vmatpush3.bf16.msra.mxu0 %v1281_v10 }
 0x23b   :  { %927 = vmatprep.subr.bf16.mxu0 %v1188_v1 }
 0x23e   :  { %928 = vmatpush3.bf16.msra.mxu0 %v1287_v11 }
 0x23f   :  { %953 = vmatprep.subr.bf16.mxu0 %v1188_v1 }
 0x2e1   :  { %v315_v17 = vpop.f32.mrf.mxu0 }
 0x2e2   :  { %v316_v18 = vadd.f32 %v1318_v23, %v315_v17 }
 0x2e3   :  { %v891_v19 = vpop.f32.mrf.mxu0 }
 0x2e4   :  { %v321_v20 = vadd.f32 %v316_v18, %v279_v16  ;;  %v328_v21 = vsub.f32 %v279_v16, %v316_v18 }
 0x2e5   :  { %v318_v22 = vpop.f32.mrf.mxu0 }
 0x2e6   :  { %v749_v24 = vmul.f32 -1.442695, %v321_v20  ;;  %v750_v25 = vmul.f32 -1.442695, %v328_v21 }
 0x2e7   :  { %v892_v26 = vpop.f32.mrf.mxu0 }
 0x2e8   :  { %1045 = vpow2.f32 %v749_v24 }
 0x2e9   :  { %1047 = vpow2.f32 %v750_v25 }
 0x2f5   :  { %v1046_v27 = vpop.eup %1045 }
 0x2f6   :  { %v1048_v28 = vpop.eup %1047  ;;  %v325_v29 = vadd.f32 1.0, %v1046_v27 }
 0x2f7   :  { %v332_v30 = vadd.f32 1.0, %v1048_v28 }
 0x2f8   :  { %1049 = vrcp.f32 %v325_v29 }
 0x2f9   :  { %1051 = vrcp.f32 %v332_v30 }
 0x305   :  { %v1050_v31 = vpop.eup %1049 }
 0x306   :  { %v1052_v32 = vpop.eup %1051  ;;  %v335_v33 = vmul.f32 %v1050_v31, %v279_v16 }
 0x307   :  { %v336_v34 = vmul.f32 %v1052_v32, %v274_v14  ;;  %v481_v32 = vpop.permute.xlu1 %480 }
 0x309   :  { %v337_v35 = vadd.f32 %v336_v34, %v335_v33 }
 0x30b   :  { %v338_v37 = vsub.f32 %v337_v35, %v274_v14  ;;  %v345_v38 = vmul.f32 %v341_v36, %v337_v35 }
 0x30d   :  { %v343_v39 = vmul.f32 %v341_v36, %v338_v37  ;;  %347 = vst [vmem:[#allocation8 + $0x10] sm:$0xff] %v345_v38 }
 0x30f   :  { %v344_v40 = vadd.f32 %v343_v39, %v274_v14 }
 0x311   :  { %v350_v41 = vpack.c.bf16 %v344_v40, %v344_v40 }
 0x313   :  { %910 = vmatmul.mubr.bf16.vlgmr.msra.gmra.mxu1 %v350_v41 }
 0x314   :  { %934 = vmatpush3.bf16.msra.mxu1 %v1248_v4  ;;  %949 = vmatprep.mubr.msk.bf16.mxu1 %vm1189_vm0, %v1188_v1 }
 0x315   :  { %935 = vmatprep.subr.bf16.mxu1 %v1188_v1 }
 0x318   :  { %936 = vmatpush3.bf16.msra.mxu1 %v1251_v5 }
 0x319   :  { %937 = vmatprep.subr.bf16.mxu1 %v1188_v1 }
 0x31c   :  { %938 = vmatpush3.bf16.msra.mxu1 %v1257_v6 }
 0x31d   :  { %939 = vmatprep.subr.bf16.mxu1 %v1188_v1 }
 0x320   :  { %940 = vmatpush3.bf16.msra.mxu1 %v1263_v7 }
 0x321   :  { %941 = vmatprep.subr.bf16.mxu1 %v1188_v1 }
 0x324   :  { %942 = vmatpush3.bf16.msra.mxu1 %v1269_v8 }
 0x325   :  { %943 = vmatprep.subr.bf16.mxu1 %v1188_v1 }
 0x328   :  { %944 = vmatpush3.bf16.msra.mxu1 %v1275_v9 }
 0x329   :  { %945 = vmatprep.subr.bf16.mxu1 %v1188_v1 }
 0x32c   :  { %946 = vmatpush3.bf16.msra.mxu1 %v1281_v10 }
 0x32d   :  { %947 = vmatprep.subr.bf16.mxu1 %v1188_v1 }
 0x330   :  { %948 = vmatpush3.bf16.msra.mxu1 %v1287_v11 }
 0x331   :  { %973 = vmatprep.subr.bf16.mxu1 %v1188_v1 }
 0x3d3   :  { %v385_v43 = vpop.f32.mrf.mxu1 }
 0x3d4   :  { %v386_v44 = vadd.f32 %v1318_v23, %v385_v43 }
 0x3d5   :  { %v911_v45 = vpop.f32.mrf.mxu1 }
 0x3d6   :  { %v391_v46 = vadd.f32 %v386_v44, %v349_v42  ;;  %v398_v47 = vsub.f32 %v349_v42, %v386_v44 }
 0x3d7   :  { %v388_v48 = vpop.f32.mrf.mxu1 }
 0x3d8   :  { %v751_v49 = vmul.f32 -1.442695, %v391_v46  ;;  %v752_v50 = vmul.f32 -1.442695, %v398_v47  ;;  %v551_v48 = vpop.permute.xlu1 %550 }
 0x3d9   :  { %v912_v51 = vpop.f32.mrf.mxu1 }
 0x3da   :  { %1053 = vpow2.f32 %v751_v49 }
 0x3db   :  { %1055 = vpow2.f32 %v752_v50 }
 0x3e7   :  { %v1054_v52 = vpop.eup %1053 }
 0x3e8   :  { %v1056_v53 = vpop.eup %1055  ;;  %v395_v54 = vadd.f32 1.0, %v1054_v52 }
 0x3e9   :  { %v402_v55 = vadd.f32 1.0, %v1056_v53 }
 0x3ea   :  { %1057 = vrcp.f32 %v395_v54  ;;  %v559_v54 = vld [vmem:[#allocation3 + $0x30] sm:$0xff] }
 0x3eb   :  { %1059 = vrcp.f32 %v402_v55 }
 0x3f7   :  { %v1058_v56 = vpop.eup %1057 }
 0x3f8   :  { %v1060_v57 = vpop.eup %1059  ;;  %v405_v58 = vmul.f32 %v1058_v56, %v349_v42 }
 0x3f9   :  { %v406_v59 = vmul.f32 %v1060_v57, %v344_v40 }
 0x3fb   :  { %v407_v60 = vadd.f32 %v406_v59, %v405_v58 }
 0x3fd   :  { %v408_v62 = vsub.f32 %v407_v60, %v344_v40  ;;  %v415_v63 = vmul.f32 %v411_v61, %v407_v60 }
 0x3ff   :  { %v413_v0 = vmul.f32 %v411_v61, %v408_v62  ;;  %417 = vst [vmem:[#allocation8 + $0x18] sm:$0xff] %v415_v63 }
 0x401   :  { %v414_v2 = vadd.f32 %v413_v0, %v344_v40 }
 0x403   :  { %v420_v3 = vpack.c.bf16 %v414_v2, %v414_v2 }
 0x405   :  { %930 = vmatmul.mubr.bf16.vlgmr.msra.gmra.mxu0 %v420_v3 }
 0x406   :  { %954 = vmatpush3.bf16.msra.mxu0 %v1248_v4  ;;  %969 = vmatprep.mubr.msk.bf16.mxu0 %vm1189_vm0, %v1188_v1 }
 0x407   :  { %955 = vmatprep.subr.bf16.mxu0 %v1188_v1 }
 0x40a   :  { %956 = vmatpush3.bf16.msra.mxu0 %v1251_v5 }
 0x40b   :  { %957 = vmatprep.subr.bf16.mxu0 %v1188_v1 }
 0x40e   :  { %958 = vmatpush3.bf16.msra.mxu0 %v1257_v6 }
 0x40f   :  { %959 = vmatprep.subr.bf16.mxu0 %v1188_v1 }
 0x412   :  { %960 = vmatpush3.bf16.msra.mxu0 %v1263_v7 }
 0x413   :  { %961 = vmatprep.subr.bf16.mxu0 %v1188_v1 }
 0x416   :  { %962 = vmatpush3.bf16.msra.mxu0 %v1269_v8 }
 0x417   :  { %963 = vmatprep.subr.bf16.mxu0 %v1188_v1 }
 0x41a   :  { %964 = vmatpush3.bf16.msra.mxu0 %v1275_v9 }
 0x41b   :  { %965 = vmatprep.subr.bf16.mxu0 %v1188_v1 }
 0x41e   :  { %966 = vmatpush3.bf16.msra.mxu0 %v1281_v10 }
 0x41f   :  { %967 = vmatprep.subr.bf16.mxu0 %v1188_v1 }
 0x422   :  { %968 = vmatpush3.bf16.msra.mxu0 %v1287_v11 }
 0x4c5   :  { %v455_v13 = vpop.f32.mrf.mxu0 }
 0x4c6   :  { %v456_v14 = vadd.f32 %v1318_v23, %v455_v13 }
 0x4c7   :  { %v931_v15 = vpop.f32.mrf.mxu0 }
 0x4c8   :  { %v461_v16 = vadd.f32 %v456_v14, %v419_v12  ;;  %v468_v17 = vsub.f32 %v419_v12, %v456_v14 }
 0x4c9   :  { %v458_v18 = vpop.f32.mrf.mxu0 }
 0x4ca   :  { %v753_v19 = vmul.f32 -1.442695, %v461_v16  ;;  %v754_v20 = vmul.f32 -1.442695, %v468_v17  ;;  %v621_v18 = vpop.permute.xlu0 %620 }
 0x4cb   :  { %v932_v21 = vpop.f32.mrf.mxu0 }
 0x4cc   :  { %1061 = vpow2.f32 %v753_v19 }
 0x4cd   :  { %1063 = vpow2.f32 %v754_v20 }
 0x4d9   :  { %v1062_v22 = vpop.eup %1061 }
 0x4da   :  { %v1064_v24 = vpop.eup %1063  ;;  %v465_v25 = vadd.f32 1.0, %v1062_v22 }
 0x4db   :  { %v472_v26 = vadd.f32 1.0, %v1064_v24 }
 0x4dc   :  { %1065 = vrcp.f32 %v465_v25  ;;  %v629_v25 = vld [vmem:[#allocation3 + $0x38] sm:$0xff] }
 0x4dd   :  { %1067 = vrcp.f32 %v472_v26 }
 0x4e9   :  { %v1066_v27 = vpop.eup %1065 }
 0x4ea   :  { %v1068_v28 = vpop.eup %1067  ;;  %v475_v29 = vmul.f32 %v1066_v27, %v419_v12 }
 0x4eb   :  { %v476_v30 = vmul.f32 %v1068_v28, %v414_v2 }
 0x4ed   :  { %v477_v31 = vadd.f32 %v476_v30, %v475_v29 }
 0x4ef   :  { %v478_v33 = vsub.f32 %v477_v31, %v414_v2  ;;  %v485_v34 = vmul.f32 %v481_v32, %v477_v31 }
 0x4f1   :  { %v483_v35 = vmul.f32 %v481_v32, %v478_v33  ;;  %487 = vst [vmem:[#allocation8 + $0x20] sm:$0xff] %v485_v34 }
 0x4f3   :  { %v484_v36 = vadd.f32 %v483_v35, %v414_v2 }
 0x4f5   :  { %v490_v37 = vpack.c.bf16 %v484_v36, %v484_v36 }
 0x4f7   :  { %950 = vmatmul.mubr.bf16.vlgmr.msra.gmra.mxu1 %v490_v37 }
 0x4f8   :  { %974 = vmatpush3.bf16.msra.mxu1 %v1248_v4  ;;  %989 = vmatprep.mubr.msk.bf16.mxu1 %vm1189_vm0, %v1188_v1  ;;  %v489_v4 = vld [vmem:[#allocation3 + $0x28] sm:$0xff] }
 0x4f9   :  { %975 = vmatprep.subr.bf16.mxu1 %v1188_v1 }
 0x4fc   :  { %976 = vmatpush3.bf16.msra.mxu1 %v1251_v5 }
 0x4fd   :  { %977 = vmatprep.subr.bf16.mxu1 %v1188_v1 }
 0x500   :  { %978 = vmatpush3.bf16.msra.mxu1 %v1257_v6 }
 0x501   :  { %979 = vmatprep.subr.bf16.mxu1 %v1188_v1 }
 0x504   :  { %980 = vmatpush3.bf16.msra.mxu1 %v1263_v7 }
 0x505   :  { %981 = vmatprep.subr.bf16.mxu1 %v1188_v1 }
 0x508   :  { %982 = vmatpush3.bf16.msra.mxu1 %v1269_v8 }
 0x509   :  { %983 = vmatprep.subr.bf16.mxu1 %v1188_v1 }
 0x50c   :  { %984 = vmatpush3.bf16.msra.mxu1 %v1275_v9 }
 0x50d   :  { %985 = vmatprep.subr.bf16.mxu1 %v1188_v1 }
 0x510   :  { %986 = vmatpush3.bf16.msra.mxu1 %v1281_v10 }
 0x511   :  { %987 = vmatprep.subr.bf16.mxu1 %v1188_v1 }
 0x514   :  { %988 = vmatpush3.bf16.msra.mxu1 %v1287_v11 }
 0x5b7   :  { %v525_v5 = vpop.f32.mrf.mxu1 }
 0x5b8   :  { %v526_v6 = vadd.f32 %v1318_v23, %v525_v5 }
 0x5b9   :  { %v951_v7 = vpop.f32.mrf.mxu1 }
 0x5ba   :  { %v531_v38 = vadd.f32 %v526_v6, %v489_v4  ;;  %v538_v39 = vsub.f32 %v489_v4, %v526_v6 }
 0x5bb   :  { %v528_v8 = vpop.f32.mrf.mxu1 }
 0x5bc   :  { %v755_v40 = vmul.f32 -1.442695, %v531_v38  ;;  %v756_v41 = vmul.f32 -1.442695, %v538_v39  ;;  %v691_v39 = vpop.permute.xlu1 %690 }
 0x5bd   :  { %v952_v42 = vpop.f32.mrf.mxu1 }
 0x5be   :  { %1069 = vpow2.f32 %v755_v40 }
 0x5bf   :  { %1071 = vpow2.f32 %v756_v41 }
 0x5cb   :  { %v1070_v9 = vpop.eup %1069 }
 0x5cc   :  { %v1072_v43 = vpop.eup %1071  ;;  %v535_v10 = vadd.f32 1.0, %v1070_v9 }
 0x5cd   :  { %v542_v44 = vadd.f32 1.0, %v1072_v43 }
 0x5ce   :  { %1073 = vrcp.f32 %v535_v10 }
 0x5cf   :  { %1075 = vrcp.f32 %v542_v44 }
 0x5db   :  { %v1074_v1 = vpop.eup %1073 }
 0x5dc   :  { %v1076_v11 = vpop.eup %1075  ;;  %v545_v45 = vmul.f32 %v1074_v1, %v489_v4 }
 0x5dd   :  { %v546_v46 = vmul.f32 %v1076_v11, %v484_v36 }
 0x5df   :  { %v547_v47 = vadd.f32 %v546_v46, %v545_v45 }
 0x5e1   :  { %v548_v49 = vsub.f32 %v547_v47, %v484_v36  ;;  %v555_v50 = vmul.f32 %v551_v48, %v547_v47 }
 0x5e3   :  { %v553_v51 = vmul.f32 %v551_v48, %v548_v49  ;;  %557 = vst [vmem:[#allocation8 + $0x28] sm:$0xff] %v555_v50 }
 0x5e5   :  { %v554_v52 = vadd.f32 %v553_v51, %v484_v36 }
 0x5e7   :  { %v560_v53 = vpack.c.bf16 %v554_v52, %v554_v52 }
 0x5e9   :  { %970 = vmatmul.mubr.bf16.vlgmr.msra.gmra.mxu0 %v560_v53 }
 0x6a9   :  { %v595_v55 = vpop.f32.mrf.mxu0 }
 0x6aa   :  { %v596_v56 = vadd.f32 %v1318_v23, %v595_v55 }
 0x6ab   :  { %v971_v57 = vpop.f32.mrf.mxu0 }
 0x6ac   :  { %v601_v58 = vadd.f32 %v596_v56, %v559_v54  ;;  %v608_v59 = vsub.f32 %v559_v54, %v596_v56 }
 0x6ad   :  { %v598_v60 = vpop.f32.mrf.mxu0 }
 0x6ae   :  { %v757_v61 = vmul.f32 -1.442695, %v601_v58  ;;  %v758_v62 = vmul.f32 -1.442695, %v608_v59 }
 0x6af   :  { %v972_v63 = vpop.f32.mrf.mxu0 }
 0x6b0   :  { %1077 = vpow2.f32 %v757_v61 }
 0x6b1   :  { %1079 = vpow2.f32 %v758_v62 }
 0x6bd   :  { %v1078_v0 = vpop.eup %1077 }
 0x6be   :  { %v1080_v2 = vpop.eup %1079  ;;  %v605_v3 = vadd.f32 1.0, %v1078_v0 }
 0x6bf   :  { %v612_v12 = vadd.f32 1.0, %v1080_v2 }
 0x6c0   :  { %1081 = vrcp.f32 %v605_v3 }
 0x6c1   :  { %1083 = vrcp.f32 %v612_v12 }
 0x6cd   :  { %v1082_v13 = vpop.eup %1081 }
 0x6ce   :  { %v1084_v14 = vpop.eup %1083  ;;  %v615_v15 = vmul.f32 %v1082_v13, %v559_v54 }
 0x6cf   :  { %v616_v16 = vmul.f32 %v1084_v14, %v554_v52 }
 0x6d1   :  { %v617_v17 = vadd.f32 %v616_v16, %v615_v15 }
 0x6d3   :  { %v618_v19 = vsub.f32 %v617_v17, %v554_v52  ;;  %v625_v20 = vmul.f32 %v621_v18, %v617_v17 }
 0x6d5   :  { %v623_v21 = vmul.f32 %v621_v18, %v618_v19  ;;  %627 = vst [vmem:[#allocation8 + $0x30] sm:$0xff] %v625_v20 }
 0x6d7   :  { %v624_v22 = vadd.f32 %v623_v21, %v554_v52 }
 0x6d9   :  { %v630_v24 = vpack.c.bf16 %v624_v22, %v624_v22 }
 0x6db   :  { %990 = vmatmul.mubr.bf16.vlgmr.msra.gmra.mxu1 %v630_v24 }
 0x79b   :  { %v665_v26 = vpop.f32.mrf.mxu1 }
 0x79c   :  { %v666_v27 = vadd.f32 %v1318_v23, %v665_v26 }
 0x79d   :  { %v991_v28 = vpop.f32.mrf.mxu1 }
 0x79e   :  { %v671_v29 = vadd.f32 %v666_v27, %v629_v25  ;;  %v678_v30 = vsub.f32 %v629_v25, %v666_v27 }
 0x79f   :  { %v668_v31 = vpop.f32.mrf.mxu1 }
 0x7a0   :  { %v759_v32 = vmul.f32 -1.442695, %v671_v29  ;;  %v760_v33 = vmul.f32 -1.442695, %v678_v30 }
 0x7a1   :  { %v992_v34 = vpop.f32.mrf.mxu1 }
 0x7a2   :  { %1085 = vpow2.f32 %v759_v32 }
 0x7a3   :  { %1087 = vpow2.f32 %v760_v33 }
 0x7af   :  { %v1086_v35 = vpop.eup %1085 }
 0x7b0   :  { %v1088_v36 = vpop.eup %1087  ;;  %v675_v37 = vadd.f32 1.0, %v1086_v35 }
 0x7b1   :  { %v682_v4 = vadd.f32 1.0, %v1088_v36 }
 0x7b2   :  { %1089 = vrcp.f32 %v675_v37 }
 0x7b3   :  { %1091 = vrcp.f32 %v682_v4 }
 0x7bf   :  { %v1090_v5 = vpop.eup %1089 }
 0x7c0   :  { %v1092_v6 = vpop.eup %1091  ;;  %v685_v7 = vmul.f32 %v1090_v5, %v629_v25 }
 0x7c1   :  { %v686_v38 = vmul.f32 %v1092_v6, %v624_v22 }
 0x7c3   :  { %v687_v23 = vadd.f32 %v686_v38, %v685_v7 }
 0x7c5   :  { %v695_v8 = vmul.f32 %v691_v39, %v687_v23  ;;  %v688_v40 = vsub.f32 %v687_v23, %v624_v22 }
 0x7c7   :  { %697 = vst [vmem:[#allocation8 + $0x38] sm:$0xff] %v695_v8  ;;  %v693_v41 = vmul.f32 %v691_v39, %v688_v40 }
 0x7c8   :  { %1144 = shalt.err (!%p1141_p0)
}
 0x7c9   :  { %714 = dma.vmem_to_hbm [thread:$0]  %s709_s8, 1024, %s1429_s4, [#allocation5], %s1182_s21, %s1182_s21, %s1183_s22   ;;  %v694_v42 = vadd.f32 %v693_v41, %v624_v22 }
 0x7ca   :  { %s1153_s14 = scalar_lea.vmem %s722_s10, 128  ;;  %p1158_p2 = scmp.lt.s32.totalorder %s722_s10, %s722_s10 }
 0x7cb   :  { %702 = vst [vmem:[#allocation9] sm:$0xff] %v694_v42  ;;  %p1154_p1 = scmp.ne.s32.totalorder %s722_s10, %s1153_s14  ;;  %p1159_p3 = scmp.lt.s32.totalorder %s1153_s14, %s1153_s14 }
 0x7cd   :  { %p1160_p4 = por %p1159_p3, %p1158_p2 }
 0x7cf   :  { %p1161_p5 = pnand %p1160_p4, %p1154_p1 }
 0x7d1   :  { %1164 = shalt.err (!%p1161_p5)
}
 0x7d2   :  { %724 = dma.vmem_to_hbm [thread:$0]  %s722_s10, 128, %s1430_s5, [#allocation10]  }
 0x7d3   :  { %1177 = dma.done.wait [#allocation5], 1024  }
 0x7d4   :  { %1178 = vsyncadd [#allocation5], 4294966272 }
 0x7d5   :  { %1179 = dma.done.wait [#allocation10], 128  }
 0x7d6   :  { %1180 = vsyncadd [#allocation10], 4294967168 }
 0x7d7   :  { %731 = vsyncpa [#allocation4], 1 }
 0x7d8   :  { %732 = vsyncpa [#allocation7], 1 }
 0x7d9   :  { %733 = vsyncpa [#allocation5], 1 }
 0x7da   :  { %734 = vsyncpa [#allocation10], 1 }

</bundles_post_ra>
